<compile_context>
chip_gen: v7x
topology: tpu7x:2x2x1
jax: 0.10.0
libtpu: 0.0.40
codegen_flags: <defaults>
</compile_context>

<pallas_src>
import functools

import jax
import jax.numpy as jnp
from jax.experimental import pallas as pl
from jax.experimental.pallas import tpu as pltpu

HIDDEN = 64
LATENT = 2


def _vae_fused_kernel(x_ref, eps_ref,
                      we_ref, be_ref,
                      wh_ref, bh_ref,
                      wd1_ref, bd1_ref,
                      wd2_ref, bd2_ref,
                      xhat_ref, stats_ref,
                      *, alphabet_size, seq_len):
    # ---- Encoder: Linear + ReLU (MXU, f32 accumulate) ----
    x = x_ref[...]                                                        # (B, A*S)
    h = jnp.dot(x, we_ref[...], preferred_element_type=jnp.float32) + be_ref[...]
    h = jnp.maximum(h, 0.0)                                               # (B, HIDDEN)

    # ---- Fused mu/logvar heads: one matmul into a packed (B, 2*LATENT) slab ----
    stats = jnp.dot(h, wh_ref[...], preferred_element_type=jnp.float32) + bh_ref[...]
    mu = stats[:, :LATENT]                                                # (B, LATENT)
    logvar = stats[:, LATENT:]                                            # (B, LATENT)

    # ---- Reparameterization (VPU/EUP, f32): z = mu + eps * exp(0.5*logvar) ----
    z = mu + eps_ref[...] * jnp.exp(0.5 * logvar)                         # (B, LATENT)

    # ---- Decoder layer 1 (K=2): VPU outer-product instead of a padded MXU matmul ----
    hd = z[:, 0:1] * wd1_ref[0:1, :] + bd1_ref[...]
    for l in range(1, LATENT):
        hd = hd + z[:, l:l + 1] * wd1_ref[l:l + 1, :]
    hd = jnp.maximum(hd, 0.0)                                             # (B, HIDDEN)

    # ---- Decoder layer 2 (MXU) ----
    logits = jnp.dot(hd, wd2_ref[...], preferred_element_type=jnp.float32) + bd2_ref[...]  # (B, A*S)

    # ---- Fused log_softmax over the alphabet axis (dim=1 of (B, A, S)) ----
    # Work on strided (B, S) slabs of the flat layout; no in-kernel reshape needed.
    S = seq_len
    m = logits[:, 0:S]
    for a in range(1, alphabet_size):
        m = jnp.maximum(m, logits[:, a * S:(a + 1) * S])
    ssum = jnp.exp(logits[:, 0:S] - m)
    for a in range(1, alphabet_size):
        ssum = ssum + jnp.exp(logits[:, a * S:(a + 1) * S] - m)
    norm = m + jnp.log(ssum)                                              # (B, S)
    for a in range(alphabet_size):
        xhat_ref[:, a * S:(a + 1) * S] = logits[:, a * S:(a + 1) * S] - norm

    # ---- Packed lane-dense stats output ----
    stats_ref[...] = stats


def vae_forward(x, eps, params):
    """x: (B, A, S) f32, eps: (B, LATENT) f32, params: the 10 Linear weights/biases."""
    we, be, w21, b21, w22, b22, wd1, bd1, wd2, bd2 = params
    B, A, S = x.shape
    input_size = A * S
    xf = x.reshape(B, input_size)

    # Merge the two tiny heads into a single (HIDDEN, 2*LATENT) matmul.
    wh = jnp.concatenate([w21, w22], axis=1)      # (HIDDEN, 2*LATENT)
    bh = jnp.concatenate([b21, b22], axis=1)      # (1, 2*LATENT)

    vmem = pl.BlockSpec(memory_space=pltpu.MemorySpace.VMEM)
    kernel = functools.partial(_vae_fused_kernel, alphabet_size=A, seq_len=S)

    # TODO(synk): at realistic sizes (B >= 128, large input_size) add a grid over B with
    # MXU-aligned row blocks, resident weights, bf16 matmul inputs and K/N blocking of we/wd2.
    xhat_flat, stats = pl.pallas_call(
        kernel,
        out_shape=(jax.ShapeDtypeStruct((B, input_size), jnp.float32),
                   jax.ShapeDtypeStruct((B, 2 * LATENT), jnp.float32)),
        in_specs=[vmem] * 10,
        out_specs=(vmem, vmem),
    )(xf, eps, we, be, wh, bh, wd1, bd1, wd2, bd2)

    x_hat = xhat_flat.reshape(B, A, S)
    mu = stats[:, :LATENT]
    logvar = stats[:, LATENT:]
    return x_hat, mu, logvar


def _ref_forward(x, eps, params):
    """Pure-JAX reference mirroring the PyTorch module (rep=True)."""
    we, be, w21, b21, w22, b22, wd1, bd1, wd2, bd2 = params
    B, A, S = x.shape
    xf = x.reshape(B, A * S)
    h = jnp.maximum(xf @ we + be, 0.0)
    mu = h @ w21 + b21
    logvar = h @ w22 + b22
    z = mu + eps * jnp.exp(0.5 * logvar)
    hd = jnp.maximum(z @ wd1 + bd1, 0.0)
    logits = (hd @ wd2 + bd2).reshape(B, A, S)
    x_hat = jax.nn.log_softmax(logits, axis=1)
    return x_hat, mu, logvar


def _init_linear(kw, kb, fan_in, fan_out):
    # Deterministic synthetic init mimicking PyTorch Linear default U(-1/sqrt(fin), 1/sqrt(fin)).
    bound = 1.0 / (fan_in ** 0.5)
    w = jax.random.uniform(kw, (fan_in, fan_out), jnp.float32, -bound, bound)
    b = jax.random.uniform(kb, (1, fan_out), jnp.float32, -bound, bound)
    return w, b


if __name__ == "__main__":
    B, A, S = 2, 4, 8            # batch, alphabet_size, seq_len
    input_size = A * S

    key = jax.random.PRNGKey(0)
    keys = jax.random.split(key, 12)

    we, be = _init_linear(keys[0], keys[1], input_size, HIDDEN)
    w21, b21 = _init_linear(keys[2], keys[3], HIDDEN, LATENT)
    w22, b22 = _init_linear(keys[4], keys[5], HIDDEN, LATENT)
    wd1, bd1 = _init_linear(keys[6], keys[7], LATENT, HIDDEN)
    wd2, bd2 = _init_linear(keys[8], keys[9], HIDDEN, input_size)
    params = (we, be, w21, b21, w22, b22, wd1, bd1, wd2, bd2)

    x = jax.random.uniform(keys[10], (B, A, S), jnp.float32)              # input
    eps = jax.random.normal(keys[11], (B, LATENT), jnp.float32)           # reparam noise

    x_hat, mu, logvar = vae_forward(x, eps, params)
    jax.block_until_ready((x_hat, mu, logvar))

    # Correctness check against pure-JAX reference
    x_hat_r, mu_r, logvar_r = _ref_forward(x, eps, params)
    assert jnp.allclose(x_hat, x_hat_r, atol=1e-5, rtol=1e-5)
    assert jnp.allclose(mu, mu_r, atol=1e-5, rtol=1e-5)
    assert jnp.allclose(logvar, logvar_r, atol=1e-5, rtol=1e-5)

    print("KERNEL_OK")
</pallas_src>

<mosaic_0001>
module attributes {stable_mosaic.version = 11 : i64} {
  func.func @_vae_fused_kernel(%arg0: memref<2x32xf32, #tpu.memory_space<vmem>>, %arg1: memref<2x2xf32, #tpu.memory_space<vmem>>, %arg2: memref<32x64xf32, #tpu.memory_space<vmem>>, %arg3: memref<1x64xf32, #tpu.memory_space<vmem>>, %arg4: memref<64x4xf32, #tpu.memory_space<vmem>>, %arg5: memref<1x4xf32, #tpu.memory_space<vmem>>, %arg6: memref<2x64xf32, #tpu.memory_space<vmem>>, %arg7: memref<1x64xf32, #tpu.memory_space<vmem>>, %arg8: memref<64x32xf32, #tpu.memory_space<vmem>>, %arg9: memref<1x32xf32, #tpu.memory_space<vmem>>, %arg10: memref<2x32xf32, #tpu.memory_space<vmem>>, %arg11: memref<2x4xf32, #tpu.memory_space<vmem>>) attributes {dimension_semantics = [], scalar_prefetch = 0 : i64, scratch_operands = 0 : i64, tpu.core_type = #tpu.core_type<tc>} {
    %c0 = arith.constant 0 : index
    %c0_0 = arith.constant 0 : index
    %0 = vector.load %arg0[%c0, %c0_0] : memref<2x32xf32, #tpu.memory_space<vmem>>, vector<2x32xf32>
    %c0_1 = arith.constant 0 : index
    %c0_2 = arith.constant 0 : index
    %1 = vector.load %arg2[%c0_1, %c0_2] : memref<32x64xf32, #tpu.memory_space<vmem>>, vector<32x64xf32>
    %cst = arith.constant dense<0.000000e+00> : vector<2x64xf32>
    %2 = tpu.matmul %0, %1, %cst {dimension_numbers = #tpu.dot_dimension_numbers<[1], [0], [0], [1], [0, 0, 1, 1], [], []>} : vector<2x32xf32>, vector<32x64xf32>, vector<2x64xf32> -> vector<2x64xf32>
    %c0_3 = arith.constant 0 : index
    %c0_4 = arith.constant 0 : index
    %3 = vector.load %arg3[%c0_3, %c0_4] : memref<1x64xf32, #tpu.memory_space<vmem>>, vector<1x64xf32>
    %4 = vector.broadcast %3 : vector<1x64xf32> to vector<2x64xf32>
    %5 = arith.addf %2, %4 : vector<2x64xf32>
    %cst_5 = arith.constant 0.000000e+00 : f32
    %6 = vector.broadcast %cst_5 : f32 to vector<2x64xf32>
    %7 = arith.maximumf %5, %6 : vector<2x64xf32>
    %c0_6 = arith.constant 0 : index
    %c0_7 = arith.constant 0 : index
    %8 = vector.load %arg4[%c0_6, %c0_7] : memref<64x4xf32, #tpu.memory_space<vmem>>, vector<64x4xf32>
    %cst_8 = arith.constant dense<0.000000e+00> : vector<2x4xf32>
    %9 = tpu.matmul %7, %8, %cst_8 {dimension_numbers = #tpu.dot_dimension_numbers<[1], [0], [0], [1], [0, 0, 1, 1], [], []>} : vector<2x64xf32>, vector<64x4xf32>, vector<2x4xf32> -> vector<2x4xf32>
    %c0_9 = arith.constant 0 : index
    %c0_10 = arith.constant 0 : index
    %10 = vector.load %arg5[%c0_9, %c0_10] : memref<1x4xf32, #tpu.memory_space<vmem>>, vector<1x4xf32>
    %11 = vector.broadcast %10 : vector<1x4xf32> to vector<2x4xf32>
    %12 = arith.addf %9, %11 : vector<2x4xf32>
    %13 = vector.extract_strided_slice %12 {offsets = [0, 0], sizes = [2, 2], strides = [1, 1]} : vector<2x4xf32> to vector<2x2xf32>
    %14 = vector.extract_strided_slice %12 {offsets = [0, 2], sizes = [2, 2], strides = [1, 1]} : vector<2x4xf32> to vector<2x2xf32>
    %c0_11 = arith.constant 0 : index
    %c0_12 = arith.constant 0 : index
    %15 = vector.load %arg1[%c0_11, %c0_12] : memref<2x2xf32, #tpu.memory_space<vmem>>, vector<2x2xf32>
    %cst_13 = arith.constant 5.000000e-01 : f32
    %16 = vector.broadcast %cst_13 : f32 to vector<2x2xf32>
    %17 = arith.mulf %16, %14 : vector<2x2xf32>
    %18 = math.exp %17 : vector<2x2xf32>
    %19 = arith.mulf %15, %18 : vector<2x2xf32>
    %20 = arith.addf %13, %19 : vector<2x2xf32>
    %21 = vector.extract_strided_slice %20 {offsets = [0, 0], sizes = [2, 1], strides = [1, 1]} : vector<2x2xf32> to vector<2x1xf32>
    %c0_14 = arith.constant 0 : index
    %c0_15 = arith.constant 0 : index
    %22 = vector.load %arg6[%c0_14, %c0_15] : memref<2x64xf32, #tpu.memory_space<vmem>>, vector<1x64xf32>
    %23 = vector.broadcast %21 : vector<2x1xf32> to vector<2x64xf32>
    %24 = vector.broadcast %22 : vector<1x64xf32> to vector<2x64xf32>
    %25 = arith.mulf %23, %24 : vector<2x64xf32>
    %c0_16 = arith.constant 0 : index
    %c0_17 = arith.constant 0 : index
    %26 = vector.load %arg7[%c0_16, %c0_17] : memref<1x64xf32, #tpu.memory_space<vmem>>, vector<1x64xf32>
    %27 = vector.broadcast %26 : vector<1x64xf32> to vector<2x64xf32>
    %28 = arith.addf %25, %27 : vector<2x64xf32>
    %29 = vector.extract_strided_slice %20 {offsets = [0, 1], sizes = [2, 1], strides = [1, 1]} : vector<2x2xf32> to vector<2x1xf32>
    %c1 = arith.constant 1 : index
    %c0_18 = arith.constant 0 : index
    %30 = vector.load %arg6[%c1, %c0_18] : memref<2x64xf32, #tpu.memory_space<vmem>>, vector<1x64xf32>
    %31 = vector.broadcast %29 : vector<2x1xf32> to vector<2x64xf32>
    %32 = vector.broadcast %30 : vector<1x64xf32> to vector<2x64xf32>
    %33 = arith.mulf %31, %32 : vector<2x64xf32>
    %34 = arith.addf %28, %33 : vector<2x64xf32>
    %cst_19 = arith.constant 0.000000e+00 : f32
    %35 = vector.broadcast %cst_19 : f32 to vector<2x64xf32>
    %36 = arith.maximumf %34, %35 : vector<2x64xf32>
    %c0_20 = arith.constant 0 : index
    %c0_21 = arith.constant 0 : index
    %37 = vector.load %arg8[%c0_20, %c0_21] : memref<64x32xf32, #tpu.memory_space<vmem>>, vector<64x32xf32>
    %cst_22 = arith.constant dense<0.000000e+00> : vector<2x32xf32>
    %38 = tpu.matmul %36, %37, %cst_22 {dimension_numbers = #tpu.dot_dimension_numbers<[1], [0], [0], [1], [0, 0, 1, 1], [], []>} : vector<2x64xf32>, vector<64x32xf32>, vector<2x32xf32> -> vector<2x32xf32>
    %c0_23 = arith.constant 0 : index
    %c0_24 = arith.constant 0 : index
    %39 = vector.load %arg9[%c0_23, %c0_24] : memref<1x32xf32, #tpu.memory_space<vmem>>, vector<1x32xf32>
    %40 = vector.broadcast %39 : vector<1x32xf32> to vector<2x32xf32>
    %41 = arith.addf %38, %40 : vector<2x32xf32>
    %42 = vector.extract_strided_slice %41 {offsets = [0, 0], sizes = [2, 8], strides = [1, 1]} : vector<2x32xf32> to vector<2x8xf32>
    %43 = vector.extract_strided_slice %41 {offsets = [0, 8], sizes = [2, 8], strides = [1, 1]} : vector<2x32xf32> to vector<2x8xf32>
    %44 = arith.maximumf %42, %43 : vector<2x8xf32>
    %45 = vector.extract_strided_slice %41 {offsets = [0, 16], sizes = [2, 8], strides = [1, 1]} : vector<2x32xf32> to vector<2x8xf32>
    %46 = arith.maximumf %44, %45 : vector<2x8xf32>
    %47 = vector.extract_strided_slice %41 {offsets = [0, 24], sizes = [2, 8], strides = [1, 1]} : vector<2x32xf32> to vector<2x8xf32>
    %48 = arith.maximumf %46, %47 : vector<2x8xf32>
    %49 = vector.extract_strided_slice %41 {offsets = [0, 0], sizes = [2, 8], strides = [1, 1]} : vector<2x32xf32> to vector<2x8xf32>
    %50 = arith.subf %49, %48 : vector<2x8xf32>
    %51 = math.exp %50 : vector<2x8xf32>
    %52 = vector.extract_strided_slice %41 {offsets = [0, 8], sizes = [2, 8], strides = [1, 1]} : vector<2x32xf32> to vector<2x8xf32>
    %53 = arith.subf %52, %48 : vector<2x8xf32>
    %54 = math.exp %53 : vector<2x8xf32>
    %55 = arith.addf %51, %54 : vector<2x8xf32>
    %56 = vector.extract_strided_slice %41 {offsets = [0, 16], sizes = [2, 8], strides = [1, 1]} : vector<2x32xf32> to vector<2x8xf32>
    %57 = arith.subf %56, %48 : vector<2x8xf32>
    %58 = math.exp %57 : vector<2x8xf32>
    %59 = arith.addf %55, %58 : vector<2x8xf32>
    %60 = vector.extract_strided_slice %41 {offsets = [0, 24], sizes = [2, 8], strides = [1, 1]} : vector<2x32xf32> to vector<2x8xf32>
    %61 = arith.subf %60, %48 : vector<2x8xf32>
    %62 = math.exp %61 : vector<2x8xf32>
    %63 = arith.addf %59, %62 : vector<2x8xf32>
    %64 = math.log %63 : vector<2x8xf32>
    %65 = arith.addf %48, %64 : vector<2x8xf32>
    %66 = vector.extract_strided_slice %41 {offsets = [0, 0], sizes = [2, 8], strides = [1, 1]} : vector<2x32xf32> to vector<2x8xf32>
    %67 = arith.subf %66, %65 : vector<2x8xf32>
    %c0_25 = arith.constant 0 : index
    %c0_26 = arith.constant 0 : index
    %68 = vector.load %arg10[%c0_25, %c0_26] : memref<2x32xf32, #tpu.memory_space<vmem>>, vector<2x8xf32>
    tpu.vector_store %arg10[%c0_25, %c0_26], %67 {strides = array<i32>} : memref<2x32xf32, #tpu.memory_space<vmem>>, vector<2x8xf32>,
    %69 = vector.extract_strided_slice %41 {offsets = [0, 8], sizes = [2, 8], strides = [1, 1]} : vector<2x32xf32> to vector<2x8xf32>
    %70 = arith.subf %69, %65 : vector<2x8xf32>
    %c0_27 = arith.constant 0 : index
    %c8 = arith.constant 8 : index
    %71 = vector.load %arg10[%c0_27, %c8] : memref<2x32xf32, #tpu.memory_space<vmem>>, vector<2x8xf32>
    tpu.vector_store %arg10[%c0_27, %c8], %70 {strides = array<i32>} : memref<2x32xf32, #tpu.memory_space<vmem>>, vector<2x8xf32>,
    %72 = vector.extract_strided_slice %41 {offsets = [0, 16], sizes = [2, 8], strides = [1, 1]} : vector<2x32xf32> to vector<2x8xf32>
    %73 = arith.subf %72, %65 : vector<2x8xf32>
    %c0_28 = arith.constant 0 : index
    %c16 = arith.constant 16 : index
    %74 = vector.load %arg10[%c0_28, %c16] : memref<2x32xf32, #tpu.memory_space<vmem>>, vector<2x8xf32>
    tpu.vector_store %arg10[%c0_28, %c16], %73 {strides = array<i32>} : memref<2x32xf32, #tpu.memory_space<vmem>>, vector<2x8xf32>,
    %75 = vector.extract_strided_slice %41 {offsets = [0, 24], sizes = [2, 8], strides = [1, 1]} : vector<2x32xf32> to vector<2x8xf32>
    %76 = arith.subf %75, %65 : vector<2x8xf32>
    %c0_29 = arith.constant 0 : index
    %c24 = arith.constant 24 : index
    %77 = vector.load %arg10[%c0_29, %c24] : memref<2x32xf32, #tpu.memory_space<vmem>>, vector<2x8xf32>
    tpu.vector_store %arg10[%c0_29, %c24], %76 {strides = array<i32>} : memref<2x32xf32, #tpu.memory_space<vmem>>, vector<2x8xf32>,
    %c0_30 = arith.constant 0 : index
    %c0_31 = arith.constant 0 : index
    %78 = vector.load %arg11[%c0_30, %c0_31] : memref<2x4xf32, #tpu.memory_space<vmem>>, vector<2x4xf32>
    tpu.vector_store %arg11[%c0_30, %c0_31], %12 {strides = array<i32>} : memref<2x4xf32, #tpu.memory_space<vmem>>, vector<2x4xf32>,
    return
  }
}

</mosaic_0001>

<bundles_post_ra>
// kernel: tpu_custom_call.1
= control target key start
LH: loop header
LB: loop body
LE: loop exit
PB: predicated region body
PF: predicated region fallthrough
CT: control target
= control target key end

     0   :  { %17 = vsyncpa [#allocation3], 0  ;;  %v637_v3 = vmov 0.0|0.0   ;;  %vm638_vm0 = vmmov 0   ;;  %v639_v6 = vmov 0.0   ;;  %s858_s0 = inlined_call_operand.vmem [shape: f32[2,32], index: 0, kind: input, shape index: {}]   ;;  %s859_s1 = inlined_call_operand.vmem [shape: f32[2,2], index: 1, kind: input, shape index: {}]   ;;  %s860_s2 = inlined_call_operand.vmem [shape: f32[32,64], index: 2, kind: input, shape index: {}]   ;;  %s861_s3 = inlined_call_operand.vmem [shape: f32[1,64], index: 3, kind: input, shape index: {}]   ;;  %s862_s4 = inlined_call_operand.vmem [shape: f32[64,4], index: 4, kind: input, shape index: {}]   ;;  %s863_s5 = inlined_call_operand.vmem [shape: f32[1,4], index: 5, kind: input, shape index: {}]   ;;  %s864_s6 = inlined_call_operand.vmem [shape: f32[2,64], index: 6, kind: input, shape index: {}]   ;;  %s865_s7 = inlined_call_operand.vmem [shape: f32[1,64], index: 7, kind: input, shape index: {}]   ;;  %s866_s8 = inlined_call_operand.vmem [shape: f32[64,32], index: 8, kind: input, shape index: {}]   ;;  %s867_s9 = inlined_call_operand.vmem [shape: f32[1,32], index: 9, kind: input, shape index: {}]   ;;  %s868_s10 = inlined_call_operand.hbm [shape: f32[2,32], index: 10, kind: output, shape index: {0}]   ;;  %s869_s11 = inlined_call_operand.hbm [shape: f32[2,4], index: 11, kind: output, shape index: {1}]  }
   0x1   :  { %v40_v0 = vld [vmem:[%s860_s2] sm:$0xff]  ;;  %v41_v1 = vld [vmem:[%s860_s2 + $0x8] sm:$0xff]  ;;  %v42_v2 = vld [vmem:[%s860_s2 + $0x10] sm:$0xff]  ;;  %530 = vmatprep.subr.bf16.mxu0 %v637_v3  ;;  %489 = vmatprep.mubr.msk.f32.mxu0 %vm638_vm0, %v639_v6 }
   0x2   :  { %v531_v4 = vpack.c.bf16 %v41_v1, %v40_v0  ;;  %v43_v5 = vld [vmem:[%s860_s2 + $0x18] sm:$0xff]  ;;  %v126_v7 = vld [vmem:[%s862_s4] sm:$0xff]  ;;  %536 = vmatprep.subr.bf16.mxu1 %v637_v3  ;;  %v127_v8 = vld [vmem:[%s862_s4 + $0x8] sm:$0xff]  ;;  %508 = vmatprep.mubr.msk.f32.mxu1 %vm638_vm0, %v639_v6 }
   0x3   :  { %v128_v9 = vld [vmem:[%s862_s4 + $0x10] sm:$0xff]  ;;  %v129_v10 = vld [vmem:[%s862_s4 + $0x18] sm:$0xff]  ;;  %v534_v11 = vpack.c.bf16 %v43_v5, %v42_v2  ;;  %v537_v12 = vpack.c.bf16 %v127_v8, %v126_v7 }
   0x4   :  { %532 = vmatpush3.bf16.msra.mxu0 %v531_v4 }
   0x5   :  { %533 = vmatprep.subr.bf16.mxu0 %v637_v3 }
   0x6   :  { %18 = vsyncpa [#allocation5], 0  ;;  %538 = vmatpush3.bf16.msra.mxu1 %v537_v12  ;;  %v540_v13 = vpack.c.bf16 %v129_v10, %v128_v9  ;;  %v130_v14 = vld [vmem:[%s862_s4 + $0x20] sm:$0xff]  ;;  %v131_v15 = vld [vmem:[%s862_s4 + $0x28] sm:$0xff]  ;;  %vm51_vm1 = vcmask 261120   ;;  %vm141_vm2 = vcmask 523264  }
   0x7   :  { %539 = vmatprep.subr.bf16.mxu1 %v637_v3  ;;  %v39_v16 = vld [vmem:[%s858_s0] sm:$0x3]  ;;  %v543_v17 = vpack.c.bf16 %v131_v15, %v130_v14  ;;  %v132_v18 = vld [vmem:[%s862_s4 + $0x30] sm:$0xff]  ;;  %v133_v19 = vld [vmem:[%s862_s4 + $0x38] sm:$0xff]  ;;  %vm419_vm3 = vcmask 25600   ;;  %v640_v32 = vmov 1  }
   0x8   :  { %535 = vmatpush3.bf16.msra.mxu0 %v534_v11  ;;  %v546_v20 = vpack.c.bf16 %v133_v19, %v132_v18  ;;  %v449_v21 = vld [vmem:[%s861_s3] ss:$0 sm:$0xff]  ;;  %575 = vset.pattern.permute.xlu1 %v640_v32  ;;  %v641_v33 = vmov 0   ;;  %v257_v35 = vld [vmem:[%s866_s8 + $0x8] sm:$0xff]  ;;  %v258_v36 = vld [vmem:[%s866_s8 + $0x10] sm:$0xff]  ;;  %s642_s12 = smov 126  }
   0x9   :  { %548 = vmatprep.subr.bf16.mxu0 %v637_v3  ;;  %v451_v26 = vld [vmem:[%s863_s5] ss:$0 sm:$0xff]  ;;  %574 = vset.pattern.permute.xlu0 %v641_v33  ;;  %v259_v38 = vld [vmem:[%s866_s8 + $0x18] sm:$0xff]  ;;  %v261_v46 = vld [vmem:[%s866_s8 + $0x28] sm:$0xff]  ;;  %s645_s4 = smov 112   ;;  %s647_s26 = smov 8  }
   0xa   :  { %541 = vmatpush3.bf16.msra.mxu1 %v540_v13  ;;  %v256_v34 = vld [vmem:[%s866_s8] sm:$0xff]  ;;  %v552_v39 = vpack.c.bf16 %v259_v38, %v258_v36  ;;  %v262_v48 = vld [vmem:[%s866_s8 + $0x30] sm:$0xff]  ;;  %v263_v49 = vld [vmem:[%s866_s8 + $0x38] sm:$0xff]  ;;  %s648_s27 = smov 24   ;;  %s649_s5 = smov [#allocation4]  }
   0xb   :  { %490 = vmatmul.mubr.msk.f32.vlgmr.msra.gmra.mrb[0].mxu0 %vm51_vm1, %v39_v16  ;;  %542 = vmatprep.subr.bf16.mxu1 %v637_v3  ;;  %v549_v37 = vpack.c.bf16 %v257_v35, %v256_v34  ;;  %v215_v41 = vld [vmem:[%s859_s1] sm:$0x3]  ;;  %v558_v50 = vpack.c.bf16 %v263_v49, %v262_v48  ;;  %s437_s28 = sshll.u32 %s649_s5, 4  ;;  %s438_s28 = int_to_ptr.vmem [resolvable:$true] %s437_s28 }
   0xc   :  { %527 = vmatprep.mubr.msk.f32.mxu0 %vm638_vm0, %v639_v6  ;;  %v260_v45 = vld [vmem:[%s866_s8 + $0x20] sm:$0xff]  ;;  %s589_s29 = scalar_lea.vmem %s438_s28, 32  ;;  %p594_p1 = scmp.lt.s32.totalorder %s438_s28, %s438_s28 }
   0xd   :  { %550 = vmatpush3.bf16.msra.mxu0 %v549_v37  ;;  %v555_v47 = vpack.c.bf16 %v261_v46, %v260_v45  ;;  %v453_v51 = vld [vmem:[%s864_s6] ss:$0 sm:$0xff]  ;;  %v455_v52 = vld [vmem:[%s864_s6 + $0x1] ss:$0 sm:$0xff]  ;;  %s643_s6 = smov 104   ;;  %p590_p0 = scmp.ne.s32.totalorder %s438_s28, %s589_s29 }
   0xe   :  { %544 = vmatpush3.bf16.msra.mxu1 %v543_v17  ;;  %551 = vmatprep.subr.bf16.mxu0 %v637_v3  ;;  %v454_v54 = vld [vmem:[%s865_s7] ss:$0 sm:$0xff]  ;;  %s644_s7 = smov 120   ;;  %p595_p2 = scmp.lt.s32.totalorder %s589_s29, %s589_s29 }
   0xf   :  { %545 = vmatprep.subr.bf16.mxu1 %v637_v3  ;;  %v456_v61 = vld [vmem:[%s867_s9] ss:$0 sm:$0xff]  ;;  %s646_s9 = smov 16  }
  0x10   :  { %p596_p3 = por %p595_p2, %p594_p1 }
  0x11   :  { %553 = vmatpush3.bf16.msra.mxu0 %v552_v39 }
  0x12   :  { %547 = vmatpush3.bf16.msra.mxu1 %v546_v20  ;;  %554 = vmatprep.subr.bf16.mxu0 %v637_v3  ;;  %p597_p4 = pnand %p596_p3, %p590_p0 }
  0x15   :  { %556 = vmatpush3.bf16.msra.mxu0 %v555_v47 }
  0x16   :  { %557 = vmatprep.subr.bf16.mxu0 %v637_v3 }
  0x19   :  { %559 = vmatpush3.bf16.msra.mxu0 %v558_v50 }
  0xde   :  { %v121_v22 = vpop.f32.mrb[0].mxu0 }
  0xdf   :  { %v122_v23 = vadd.f32 %v449_v21, %v121_v22  ;;  %v491_v24 = vpop.f32.mrb[1].mxu0 }
  0xe1   :  { %v125_v25 = vmax.f32 %v122_v23, 0.0 }
  0xe3   :  { %509 = vmatmul.mubr.msk.f32.vlgmr.msra.gmra.mrb[0].mxu1 %vm141_vm2, %v125_v25 }
 0x1b6   :  { %v211_v27 = vpop.f32.mrb[0].mxu1 }
 0x1b7   :  { %v212_v28 = vadd.f32 %v451_v26, %v211_v27  ;;  %v510_v29 = vpop.f32.mrb[1].mxu1 }
 0x1b9   :  { %v216_v30 = vmul.f32 0.5, %v212_v28  ;;  %420 = vst.msk [vmem:[#allocation4] sm:$0x3] %vm419_vm3, %v212_v28 }
 0x1bb   :  { %v217_v31 = vmul.f32 1.442695, %v216_v30 }
 0x1bd   :  { %577 = vpow2.f32 %v217_v31 }
 0x1c7   :  { %v578_v40 = vpop.eup %577 }
 0x1c8   :  { %220 = vrot.lane.b32.xlu0 %v578_v40, %s642_s12 }
 0x23a   :  { %v221_v42 = vpop.permute.xlu0 %220 }
 0x23b   :  { %v223_v43 = vmul.f32 %v221_v42, %v215_v41 }
 0x23d   :  { %v224_v44 = vadd.f32 %v223_v43, %v212_v28 }
 0x23f   :  { %246 = vperm.xlu1 %575, %v224_v44   ;;  %228 = vperm.xlu0 %574, %v224_v44  }
 0x243   :  { %576 = vset.pattern.permute.xlu0 %v640_v32 }
 0x2be   :  { %v247_v53 = vpop.permute.xlu1 %246  ;;  %v229_v55 = vpop.permute.xlu0 %228 }
 0x2bf   :  { %v235_v56 = vmul.f32 %v453_v51, %v229_v55  ;;  %v253_v57 = vmul.f32 %v455_v52, %v247_v53 }
 0x2c1   :  { %v243_v58 = vadd.f32 %v454_v54, %v235_v56 }
 0x2c3   :  { %v254_v59 = vadd.f32 %v253_v57, %v243_v58 }
 0x2c5   :  { %v255_v60 = vmax.f32 %v254_v59, 0.0 }
 0x2c7   :  { %528 = vmatmul.mubr.msk.f32.vlgmr.msra.gmra.mrb[2].mxu0 %vm141_vm2, %v255_v60 }
 0x39a   :  { %v340_v62 = vpop.f32.mrb[2].mxu0 }
 0x39b   :  { %v810_v63 = vadd.f32 %v456_v61, %v340_v62  ;;  %v529_v0 = vpop.f32.mrb[3].mxu0 }
 0x39d   :  { %353 = vrot.lane.b32.xlu0 %v810_v63, %s643_s6  ;;  %345 = vrot.lane.b32.xlu1 %v810_v63, %s644_s7 }
 0x3a1   :  { %349 = vrot.lane.b32.xlu1 %v810_v63, %s645_s4 }
 0x40f   :  { %v346_v1 = vpop.permute.xlu1 %345  ;;  %v354_v5 = vpop.permute.xlu0 %353 }
 0x410   :  { %v348_v2 = vmax.f32 %v810_v63, %v346_v1 }
 0x413   :  { %v350_v3 = vpop.permute.xlu1 %349 }
 0x414   :  { %v352_v4 = vmax.f32 %v348_v2, %v350_v3 }
 0x416   :  { %v356_v6 = vmax.f32 %v352_v4, %v354_v5 }
 0x418   :  { %372 = vrot.lane.b32.xlu0 %v356_v6, %s646_s9  ;;  %361 = vrot.lane.b32.xlu1 %v356_v6, %s647_s26  ;;  %v357_v19 = vsub.f32 %v810_v63, %v356_v6 }
 0x41a   :  { %v358_v20 = vmul.f32 1.442695, %v357_v19 }
 0x41c   :  { %383 = vrot.lane.b32.xlu1 %v356_v6, %s648_s27 }
 0x48a   :  { %v373_v7 = vpop.permute.xlu0 %372  ;;  %v362_v8 = vpop.permute.xlu1 %361 }
 0x48b   :  { %v375_v9 = vsub.f32 %v810_v63, %v373_v7  ;;  %v364_v10 = vsub.f32 %v810_v63, %v362_v8 }
 0x48d   :  { %v376_v11 = vmul.f32 1.442695, %v375_v9  ;;  %v365_v12 = vmul.f32 1.442695, %v364_v10 }
 0x48e   :  { %v384_v13 = vpop.permute.xlu1 %383 }
 0x48f   :  { %579 = vpow2.f32 %v376_v11  ;;  %v386_v14 = vsub.f32 %v810_v63, %v384_v13 }
 0x490   :  { %581 = vpow2.f32 %v365_v12 }
 0x491   :  { %v387_v15 = vmul.f32 1.442695, %v386_v14 }
 0x493   :  { %583 = vpow2.f32 %v387_v15 }
 0x494   :  { %585 = vpow2.f32 %v358_v20 }
 0x499   :  { %v580_v16 = vpop.eup %579 }
 0x49a   :  { %v582_v17 = vpop.eup %581  ;;  %379 = vrot.lane.b32.xlu1 %v580_v16, %s645_s4 }
 0x49b   :  { %368 = vrot.lane.b32.xlu0 %v582_v17, %s644_s7 }
 0x49d   :  { %v584_v18 = vpop.eup %583 }
 0x49e   :  { %v586_v21 = vpop.eup %585 }
 0x49f   :  { %390 = vrot.lane.b32.xlu0 %v584_v18, %s643_s6 }
 0x50c   :  { %v380_v24 = vpop.permute.xlu1 %379 }
 0x50d   :  { %v369_v22 = vpop.permute.xlu0 %368 }
 0x50e   :  { %v371_v23 = vadd.f32 %v586_v21, %v369_v22 }
 0x510   :  { %v382_v25 = vadd.f32 %v380_v24, %v371_v23 }
 0x511   :  { %v391_v26 = vpop.permute.xlu0 %390 }
 0x512   :  { %v393_v27 = vadd.f32 %v391_v26, %v382_v25 }
 0x514   :  { %587 = vlog2.f32 %v393_v27 }
 0x515   :  { %600 = shalt.err (!%p597_p4)
}
 0x516   :  { %s601_s2 = scalar_lea.hbm %s869_s11, 32 }
 0x517   :  { %p602_p5 = scmp.ne.s32.totalorder %s869_s11, %s601_s2  ;;  %p605_p6 = scmp.lt.u32.totalorder %s601_s2, %s869_s11 }
 0x519   :  { %p607_p7 = pnand %p605_p6, %p602_p5 }
 0x51b   :  { %610 = shalt.err (!%p607_p7)
}
 0x51c   :  { %440 = dma.vmem_to_hbm [thread:$0]  %s438_s28, 32, %s869_s11, [#allocation5]   ;;  %vm398_vm4 = vcmask 58368   ;;  %vm405_vm5 = vcmask 123968   ;;  %vm411_vm6 = vcmask 189568   ;;  %vm417_vm7 = vcmask 255168  }
 0x51d   :  { %s650_s11 = smov [#allocation2]  }
 0x51e   :  { %v588_v28 = vpop.eup %587  ;;  %s427_s19 = sshll.u32 %s650_s11, 4  ;;  %s428_s19 = int_to_ptr.vmem [resolvable:$true] %s427_s19 }
 0x51f   :  { %v395_v29 = vmul.f32 0.6931472, %v588_v28  ;;  %s611_s1 = scalar_lea.vmem %s428_s19, 32  ;;  %p616_p9 = scmp.lt.s32.totalorder %s428_s19, %s428_s19 }
 0x520   :  { %p612_p8 = scmp.ne.s32.totalorder %s428_s19, %s611_s1  ;;  %p617_p10 = scmp.lt.s32.totalorder %s611_s1, %s611_s1 }
 0x521   :  { %v396_v30 = vadd.f32 %v395_v29, %v356_v6 }
 0x522   :  { %p618_p11 = por %p617_p10, %p616_p9 }
 0x523   :  { %407 = vrot.lane.b32.xlu0 %v396_v30, %s646_s9  ;;  %401 = vrot.lane.b32.xlu1 %v396_v30, %s647_s26  ;;  %v397_v31 = vsub.f32 %v810_v63, %v396_v30 }
 0x524   :  { %p619_p12 = pnand %p618_p11, %p612_p8 }
 0x525   :  { %399 = vst.msk [vmem:[#allocation2] sm:$0x3] %vm398_vm4, %v397_v31 }
 0x527   :  { %413 = vrot.lane.b32.xlu1 %v396_v30, %s648_s27 }
 0x595   :  { %v408_v32 = vpop.permute.xlu0 %407  ;;  %v402_v33 = vpop.permute.xlu1 %401 }
 0x596   :  { %v410_v34 = vsub.f32 %v810_v63, %v408_v32  ;;  %v404_v35 = vsub.f32 %v810_v63, %v402_v33 }
 0x598   :  { %406 = vst.msk [vmem:[#allocation2] sm:$0x3] %vm405_vm5, %v404_v35 }
 0x599   :  { %v414_v36 = vpop.permute.xlu1 %413  ;;  %412 = vst.msk [vmem:[#allocation2] sm:$0x3] %vm411_vm6, %v410_v34 }
 0x59a   :  { %v416_v37 = vsub.f32 %v810_v63, %v414_v36 }
 0x59c   :  { %418 = vst.msk [vmem:[#allocation2] sm:$0x3] %vm417_vm7, %v416_v37 }
 0x59d   :  { %622 = shalt.err (!%p619_p12)
}
 0x59e   :  { %s623_s22 = scalar_lea.hbm %s868_s10, 32 }
 0x59f   :  { %p624_p13 = scmp.ne.s32.totalorder %s868_s10, %s623_s22  ;;  %p627_p0 = scmp.lt.u32.totalorder %s623_s22, %s868_s10 }
 0x5a1   :  { %p629_p1 = pnand %p627_p0, %p624_p13 }
 0x5a3   :  { %632 = shalt.err (!%p629_p1)
}
 0x5a4   :  { %430 = dma.vmem_to_hbm [thread:$0]  %s428_s19, 32, %s868_s10, [#allocation3]  }
 0x5a5   :  { %633 = dma.done.wait [#allocation3], 32  }
 0x5a6   :  { %634 = vsyncadd [#allocation3], 4294967264 }
 0x5a7   :  { %635 = dma.done.wait [#allocation5], 32  }
 0x5a8   :  { %636 = vsyncadd [#allocation5], 4294967264 }
 0x5a9   :  { %447 = vsyncpa [#allocation3], 1 }
 0x5aa   :  { %448 = vsyncpa [#allocation5], 1 }

</bundles_post_ra>
